<compile_context>
chip_gen: v5e
topology: v5e:2x2
jax: 0.10.0
libtpu: 0.0.40
codegen_flags: <defaults>
</compile_context>

<pallas_src>
import functools

import jax
import jax.numpy as jnp
from jax.experimental import pallas as pl
from jax.experimental.pallas import tpu as pltpu


def _round_up(x: int, m: int) -> int:
    return ((x + m - 1) // m) * m


# ---------------------------------------------------------------------------
# Kernel: one lane-dense fused matmul for both heads.
# ---------------------------------------------------------------------------
def _fused_actor_critic_kernel(x_ref, w_ref, b_ref, out_ref):
    """x_ref: [TM, H]; w_ref: [H, 128]; b_ref: [1, 128]; out_ref: [TM, 128]."""
    acc = jnp.dot(x_ref[...], w_ref[...], preferred_element_type=jnp.float32)
    out_ref[...] = (acc + b_ref[...]).astype(out_ref.dtype)


# ---------------------------------------------------------------------------
# One-time parameter fusion (call at init, NOT per forward).
# ---------------------------------------------------------------------------
def fuse_params(w_actor_t, b_actor, w_critic_t, b_critic):
    """Fuse actor+critic weights/bias into a single lane-padded [H, 128] head.

    w_actor_t:  [H, A]   (pre-transposed: in_features x out_features)
    b_actor:    [1, A]
    w_critic_t: [H, 1]
    b_critic:   [1, 1]
    Returns (w_fused [H, n_pad], b_fused [1, n_pad] f32).
    """
    A = w_actor_t.shape[1]
    n_used = A + 1
    n_pad = _round_up(n_used, 128)
    w_fused = jnp.concatenate([w_actor_t, w_critic_t], axis=1)
    w_fused = jnp.pad(w_fused, ((0, 0), (0, n_pad - n_used)))
    b_fused = jnp.concatenate([b_actor, b_critic], axis=1).astype(jnp.float32)
    b_fused = jnp.pad(b_fused, ((0, 0), (0, n_pad - n_used)))
    return w_fused, b_fused


# ---------------------------------------------------------------------------
# Forward pass wrapper.
# ---------------------------------------------------------------------------
@functools.partial(jax.jit, static_argnames=("num_actions", "block_m"))
def actor_critic_forward(x, w_fused, b_fused, *, num_actions, block_m=2048):
    """x: [B, H]; w_fused: [H, n_pad]; b_fused: [1, n_pad].

    Returns (action_logits [B, A], value [B, 1]).
    """
    B, H = x.shape
    n_pad = w_fused.shape[1]
    A = num_actions

    # Sublane alignment: 8 rows for 4-byte dtypes, 16 for 2-byte (bf16/fp16).
    sublane = 8 if jnp.dtype(x.dtype).itemsize == 4 else 16
    block_m = max(sublane, (block_m // sublane) * sublane)

    # --- Tile selection (no pad copy for the common small-batch case). -----
    min_tile_for_split = 512  # below this, per-step overhead beats 2-TC split
    if B <= block_m:
        n_tiles = 2 if B >= 2 * min_tile_for_split else 1
    else:
        n_tiles = pl.cdiv(B, block_m)

    if n_tiles == 1:
        # Single full-array block: block_shape == array dims, so the (8,128)
        # divisibility rule does not apply and no batch padding is needed.
        tm = B
        b_padded = B
        x_in = x
    else:
        tm = _round_up(pl.cdiv(B, n_tiles), sublane)
        b_padded = n_tiles * tm
        x_in = jnp.pad(x, ((0, b_padded - B), (0, 0))) if b_padded != B else x

    grid = (n_tiles,)

    dsize = jnp.dtype(x.dtype).itemsize
    cost = pl.CostEstimate(
        flops=2 * b_padded * H * n_pad,
        transcendentals=0,
        bytes_accessed=(b_padded * H * dsize          # x stream
                        + H * n_pad * dsize           # fused weight (resident)
                        + n_pad * 4                   # fused bias (f32)
                        + b_padded * n_pad * dsize),  # fused output
    )

    fused_out = pl.pallas_call(
        _fused_actor_critic_kernel,
        out_shape=jax.ShapeDtypeStruct((b_padded, n_pad), x.dtype),
        grid_spec=pltpu.PrefetchScalarGridSpec(
            num_scalar_prefetch=0,
            grid=grid,
            in_specs=[
                pl.BlockSpec((tm, H), lambda i: (i, 0)),       # x: streamed
                pl.BlockSpec((H, n_pad), lambda i: (0, 0)),    # w: resident
                pl.BlockSpec((1, n_pad), lambda i: (0, 0)),    # b: resident
            ],
            out_specs=pl.BlockSpec((tm, n_pad), lambda i: (i, 0)),
        ),
        compiler_params=pltpu.CompilerParams(
            dimension_semantics=("parallel",),   # shards batch across v7x TCs
        ),
        cost_estimate=cost,
    )(x_in, w_fused, b_fused)

    # --- Slice ONCE to the used rows/columns, then split heads lazily. -----
    heads = fused_out[:B, :A + 1]
    action_logits = heads[:, :A]
    value = heads[:, A:A + 1]
    return action_logits, value


# ---------------------------------------------------------------------------
# Init matching nn.Linear's U(-1/sqrt(in), 1/sqrt(in)).
# ---------------------------------------------------------------------------
def init_params(key, hidden_dim, num_actions, dtype=jnp.float32):
    k1, k2, k3, k4 = jax.random.split(key, 4)
    bound = 1.0 / jnp.sqrt(hidden_dim)
    # Stored pre-transposed: [in_features, out_features]
    w_actor_t = jax.random.uniform(k1, (hidden_dim, num_actions), dtype,
                                   minval=-bound, maxval=bound)
    b_actor = jax.random.uniform(k2, (1, num_actions), dtype,
                                 minval=-bound, maxval=bound)
    w_critic_t = jax.random.uniform(k3, (hidden_dim, 1), dtype,
                                    minval=-bound, maxval=bound)
    b_critic = jax.random.uniform(k4, (1, 1), dtype,
                                  minval=-bound, maxval=bound)
    return w_actor_t, b_actor, w_critic_t, b_critic


if __name__ == "__main__":
    # Small shapes consistent with the module: batch=8, hidden_dim=32, actions=6
    batch, hidden_dim, num_actions = 8, 32, 6

    key = jax.random.PRNGKey(0)
    kx, kp = jax.random.split(key)
    x = jax.random.normal(kx, (batch, hidden_dim), jnp.float32)
    w_actor_t, b_actor, w_critic_t, b_critic = init_params(
        kp, hidden_dim, num_actions)

    # One-time fusion/padding of the head parameters.
    w_fused, b_fused = fuse_params(w_actor_t, b_actor, w_critic_t, b_critic)
    w_fused, b_fused = jax.block_until_ready((w_fused, b_fused))

    logits, value = actor_critic_forward(x, w_fused, b_fused,
                                         num_actions=num_actions)
    jax.block_until_ready((logits, value))

    # Reference check against plain JAX.
    ref_logits = x @ w_actor_t + b_actor
    ref_value = x @ w_critic_t + b_critic
    assert logits.shape == (batch, num_actions)
    assert value.shape == (batch, 1)
    assert jnp.allclose(logits, ref_logits, atol=1e-5, rtol=1e-5)
    assert jnp.allclose(value, ref_value, atol=1e-5, rtol=1e-5)

    print("KERNEL_OK")
</pallas_src>

<mosaic_0001>
module attributes {stable_mosaic.version = 11 : i64} {
  func.func @_fused_actor_critic_kernel(%arg0: i32, %arg1: memref<8x32xf32, #tpu.memory_space<vmem>>, %arg2: memref<32x128xf32, #tpu.memory_space<vmem>>, %arg3: memref<1x128xf32, #tpu.memory_space<vmem>>, %arg4: memref<8x128xf32, #tpu.memory_space<vmem>>) attributes {dimension_semantics = [#tpu.dimension_semantics<parallel>], iteration_bounds = array<i64: 1>, scalar_prefetch = 0 : i64, scratch_operands = 0 : i64, tpu.core_type = #tpu.core_type<tc>, window_params = [{transform_indices = @transform_0, window_bounds = array<i64: 8, 32>}, {pipeline_mode = #tpu.pipeline_mode<synchronous>, transform_indices = @transform_1, window_bounds = array<i64: 32, 128>}, {pipeline_mode = #tpu.pipeline_mode<synchronous>, transform_indices = @transform_2, window_bounds = array<i64: 1, 128>}, {transform_indices = @transform_3, window_bounds = array<i64: 8, 128>}]} {
    %c0 = arith.constant 0 : index
    %c0_0 = arith.constant 0 : index
    %0 = vector.load %arg1[%c0, %c0_0] : memref<8x32xf32, #tpu.memory_space<vmem>>, vector<8x32xf32>
    %c0_1 = arith.constant 0 : index
    %c0_2 = arith.constant 0 : index
    %1 = vector.load %arg2[%c0_1, %c0_2] : memref<32x128xf32, #tpu.memory_space<vmem>>, vector<32x128xf32>
    %cst = arith.constant dense<0.000000e+00> : vector<8x128xf32>
    %2 = tpu.matmul %0, %1, %cst {dimension_numbers = #tpu.dot_dimension_numbers<[1], [0], [0], [1], [0, 0, 1, 1], [], []>} : vector<8x32xf32>, vector<32x128xf32>, vector<8x128xf32> -> vector<8x128xf32>
    %c0_3 = arith.constant 0 : index
    %c0_4 = arith.constant 0 : index
    %3 = vector.load %arg3[%c0_3, %c0_4] : memref<1x128xf32, #tpu.memory_space<vmem>>, vector<1x128xf32>
    %4 = vector.broadcast %3 : vector<1x128xf32> to vector<8x128xf32>
    %5 = arith.addf %2, %4 : vector<8x128xf32>
    %c0_5 = arith.constant 0 : index
    %c0_6 = arith.constant 0 : index
    %6 = vector.load %arg4[%c0_5, %c0_6] : memref<8x128xf32, #tpu.memory_space<vmem>>, vector<8x128xf32>
    tpu.vector_store %arg4[%c0_5, %c0_6], %5 {strides = array<i32>} : memref<8x128xf32, #tpu.memory_space<vmem>>, vector<8x128xf32>,
    return
  }
  func.func @transform_0(%arg0: i32) -> (i32, i32) {
    %c0_i32 = arith.constant 0 : i32
    %c0_i32_0 = arith.constant 0 : i32
    return %arg0, %c0_i32 : i32, i32
  }
  func.func @transform_1(%arg0: i32) -> (i32, i32) {
    %c0_i32 = arith.constant 0 : i32
    %c0_i32_0 = arith.constant 0 : i32
    %c0_i32_1 = arith.constant 0 : i32
    return %c0_i32, %c0_i32_0 : i32, i32
  }
  func.func @transform_2(%arg0: i32) -> (i32, i32) {
    %c0_i32 = arith.constant 0 : i32
    %c0_i32_0 = arith.constant 0 : i32
    %c0_i32_1 = arith.constant 0 : i32
    return %c0_i32, %c0_i32_0 : i32, i32
  }
  func.func @transform_3(%arg0: i32) -> (i32, i32) {
    %c0_i32 = arith.constant 0 : i32
    %c0_i32_0 = arith.constant 0 : i32
    return %arg0, %c0_i32 : i32, i32
  }
}

</mosaic_0001>

<bundles_post_ra>
// kernel: actor_critic_forward.1
= control target key start
LH: loop header
LB: loop body
LE: loop exit
PB: predicated region body
PF: predicated region fallthrough
CT: control target
= control target key end

     0   :  { %8 = vsyncpa [#allocation3], 0  ;;  %s178_s0 = inlined_call_operand.hbm [shape: f32[8,32], index: 0, kind: input, shape index: {}]   ;;  %s179_s1 = inlined_call_operand.hbm [shape: f32[32,128], index: 1, kind: input, shape index: {}]   ;;  %s180_s2 = inlined_call_operand.vmem [shape: f32[1,128], index: 2, kind: input, shape index: {}]   ;;  %s181_s3 = inlined_call_operand.vmem [shape: f32[8,128], index: 3, kind: output, shape index: {}]  }
   0x1   :  { %s15_s14 = sshll.u32 %s178_s0, 4  ;;  %s16_s14 = int_to_ptr.hbm [resolvable:$true] %s15_s14 }
   0x2   :  { %9 = vsyncpa [#allocation5], 0  ;;  %s142_s15 = smov [#allocation2]   ;;  %s25_s19 = sshll.u32 %s179_s1, 4  ;;  %s26_s19 = int_to_ptr.hbm [resolvable:$true] %s25_s19 }
   0x3   :  { %s17_s16 = sshll.u32 %s142_s15, 4  ;;  %s143_s20 = smov [#allocation4]   ;;  %s18_s16 = int_to_ptr.vmem [resolvable:$true] %s17_s16 }
   0x4   :  { %20 = dma.hbm_to_vmem [thread:$0]  %s16_s14, 128, %s18_s16, [#allocation3]  }
   0x5   :  { %s27_s21 = sshll.u32 %s143_s20, 4  ;;  %s144_s22 = smov 128   ;;  %s28_s21 = int_to_ptr.vmem [resolvable:$true] %s27_s21 }
   0x6   :  { %s145_s23 = smov 8  }
   0x7   :  { %33 = dma.hbm_to_vmem [thread:$0]  %s26_s19, 512, %s28_s21, [#allocation5], %s144_s22, %s144_s22, %s145_s23  }
   0x8   :  { %138 = dma.done.wait [#allocation3], 128  }
   0x9   :  { %139 = vsyncadd [#allocation3], 4294967168 }
   0xa   :  { %140 = dma.done.wait [#allocation5], 512  }
   0xb   :  { %141 = vsyncadd [#allocation5], 4294966784  ;;  %v48_v0 = vld [vmem:[#allocation4 + $0x18] sm:$0xff]  ;;  %v47_v1 = vld [vmem:[#allocation4 + $0x10] sm:$0xff]  ;;  %vm53_vm0 = vcmask 261120  }
   0xc   :  { %69 = vmatpush.msra.mxu0 %v48_v0  ;;  %v46_v2 = vld [vmem:[#allocation4 + $0x8] sm:$0xff]  ;;  %v45_v3 = vld [vmem:[#allocation4] sm:$0xff]  ;;  %v44_v4 = vld [vmem:[#allocation2] sm:$0xff] }
   0xd   :  { %v89_v5 = vld [vmem:[%s180_s2] ss:$0 sm:$0xff] }
   0xe   :  { %70 = vmatpush.msra.mxu0 %v47_v1 }
  0x10   :  { %71 = vmatpush.msra.mxu0 %v46_v2 }
  0x12   :  { %72 = vmatpush.msra.mxu0 %v45_v3 }
  0x13   :  { %84 = vmatmul.msk.f32.vlgmr.msra.gmra.mxu0 %vm53_vm0, %v44_v4 }
  0x90   :  { %v74_v6 = vpop.f32.mrf.mxu0 }
  0x91   :  { %v75_v7 = vadd.f32 %v89_v5, %v74_v6 }
  0x93   :  { %77 = vst [vmem:[%s181_s3] sm:$0xff] %v75_v7 }
  0x94   :  { %82 = vsyncpa [#allocation3], 1 }
  0x95   :  { %83 = vsyncpa [#allocation5], 1 }

</bundles_post_ra>
